<compile_context>
chip_gen: v7x
topology: tpu7x:2x2x1
jax: 0.10.0
libtpu: 0.0.40
codegen_flags: <defaults>
</compile_context>

<pallas_src>
import functools

import jax
import jax.numpy as jnp
from jax.experimental import pallas as pl
from jax.experimental.pallas import tpu as pltpu


def _round_up(x, m):
    return ((x + m - 1) // m) * m


def _vae_kernel(
    x_ref, eps_ref,
    w_e1, w_e2, w_head, w_d1, w_d2, w_out,
    b_ref,
    zms_ref, xbar_ref,
    *, dims, zms_w,
):
    """One batch tile of the full VAE forward (weights are VMEM-resident)."""
    n_input, n_enc_1, n_enc_2, n_z, n_dec_1, n_dec_2 = dims

    x = x_ref[...]

    # Packed, zero-padded biases: one row per layer, only the first `width` lanes used.
    b_e1 = b_ref[0:1, :n_enc_1]
    b_e2 = b_ref[1:2, :n_enc_2]
    b_head = b_ref[2:3, :2 * n_z]
    b_d1 = b_ref[3:4, :n_dec_1]
    b_d2 = b_ref[4:5, :n_dec_2]
    b_out = b_ref[5:6, :n_input]

    # ---- Encoder (denoise=False path; no dropout) ----
    # TODO(synk): denoise=True dropout path not implemented; it would need
    #             pltpu.prng_seed + pltpu.stateful_bernoulli inside the kernel.
    h1 = jnp.maximum(
        jnp.dot(x, w_e1[...], preferred_element_type=jnp.float32) + b_e1, 0.0)
    h2 = jnp.maximum(
        jnp.dot(h1, w_e2[...], preferred_element_type=jnp.float32) + b_e2, 0.0)

    # Fused mu|sigma head: single MXU push; `head` is already [mu | sigma] contiguous.
    head = jnp.dot(h2, w_head[...], preferred_element_type=jnp.float32) + b_head
    mu = head[:, :n_z]
    sigma = head[:, n_z:]

    # ---- Reparameterization: z = mu + eps * sigma ----
    z = mu + eps_ref[...] * sigma

    # ---- Decoder ----
    d1 = jnp.maximum(
        jnp.dot(z, w_d1[...], preferred_element_type=jnp.float32) + b_d1, 0.0)
    d2 = jnp.maximum(
        jnp.dot(d1, w_d2[...], preferred_element_type=jnp.float32) + b_d2, 0.0)
    logits = jnp.dot(d2, w_out[...], preferred_element_type=jnp.float32) + b_out
    x_bar = jax.nn.sigmoid(logits)

    # Packed z|mu|sigma slab, zero-padded to a 128-multiple lane width so the
    # writeback is one unmasked lane-dense store.
    parts = [z, head]
    pad_w = zms_w - 3 * n_z
    if pad_w > 0:
        parts.append(jnp.zeros((z.shape[0], pad_w), jnp.float32))
    zms_ref[...] = jnp.concatenate(parts, axis=-1).astype(zms_ref.dtype)
    xbar_ref[...] = x_bar.astype(xbar_ref.dtype)


def prepare_params(params):
    """One-time transform of PyTorch-convention params (W [out,in], b [out]).

    Transposes weights to [in, out], fuses the mu/sigma heads, and packs all
    biases into one zero-padded [8, P] array. Call once; reuse across forwards.
    """
    def wt(name):
        w, b = params[name]
        return jnp.asarray(w, jnp.float32).T, jnp.asarray(b, jnp.float32)

    w_e1, b_e1 = wt("enc_1")
    w_e2, b_e2 = wt("enc_2")
    w_mu, b_mu = wt("enc_mu")
    w_sig, b_sig = wt("enc_sigma")
    w_d1, b_d1 = wt("dec_1")
    w_d2, b_d2 = wt("dec_2")
    w_out, b_out = wt("x_bar")

    n_input, n_enc_1 = w_e1.shape
    n_enc_2 = w_e2.shape[1]
    n_z = w_mu.shape[1]
    n_dec_1 = w_d1.shape[1]
    n_dec_2 = w_d2.shape[1]

    # Fuse mu and sigma heads: [n_enc_2, 2*n_z].
    w_head = jnp.concatenate([w_mu, w_sig], axis=1)
    b_head = jnp.concatenate([b_mu, b_sig], axis=0)

    biases = [b_e1, b_e2, b_head, b_d1, b_d2, b_out]
    pad_w = _round_up(max(b.shape[0] for b in biases), 128)
    b_pack = jnp.zeros((8, pad_w), jnp.float32)
    for i, b in enumerate(biases):
        b_pack = b_pack.at[i, : b.shape[0]].set(b)

    return dict(
        weights=(w_e1, w_e2, w_head, w_d1, w_d2, w_out),
        bias_pack=b_pack,
        dims=(n_input, n_enc_1, n_enc_2, n_z, n_dec_1, n_dec_2),
    )


def vae_forward(x, eps, prepared, *, block_b=512):
    """Batched VAE forward. x: [B, n_input] f32, eps: [B, n_z] f32."""
    n_input, n_enc_1, n_enc_2, n_z, n_dec_1, n_dec_2 = prepared["dims"]
    weights = prepared["weights"]
    b_pack = prepared["bias_pack"]

    vmem_limit = 48 * 1024 * 1024          # < 64 MiB physical VMEM on v7x
    zms_w = _round_up(3 * n_z, 128)        # lane-dense packed z|mu|sigma slab

    B = x.shape[0]
    # Batch tile: multiple of 8 sublanes, clamped to (padded) batch size.
    tb = _round_up(min(block_b, _round_up(B, 8)), 8)
    # Clamp tb so double-buffered streamed tiles + resident params fit the budget.
    resident_bytes = 4 * (sum(int(w.size) for w in weights) + int(b_pack.size))
    per_row_stream = 4 * (2 * (n_input + n_z + zms_w + n_input))  # 2x = double buffer
    while tb > 8 and resident_bytes + tb * per_row_stream > vmem_limit // 2:
        tb //= 2
        tb = _round_up(tb, 8)
    b_pad = _round_up(B, tb)
    if b_pad != B:
        x = jnp.pad(x, ((0, b_pad - B), (0, 0)))
        eps = jnp.pad(eps, ((0, b_pad - B), (0, 0)))

    grid = (b_pad // tb,)

    def stream(nf):           # activation tiles, advance with the batch grid
        return pl.BlockSpec((tb, nf), lambda i: (i, 0))

    def resident(arr):        # weights/biases: same block every step -> stay in VMEM
        return pl.BlockSpec(arr.shape, lambda i: (0, 0))

    in_specs = ([stream(n_input), stream(n_z)]
                + [resident(w) for w in weights]
                + [resident(b_pack)])
    out_specs = (stream(zms_w), stream(n_input))
    out_shape = (
        jax.ShapeDtypeStruct((b_pad, zms_w), jnp.float32),
        jax.ShapeDtypeStruct((b_pad, n_input), jnp.float32),
    )

    flops = 2 * b_pad * (
        n_input * n_enc_1 + n_enc_1 * n_enc_2 + n_enc_2 * 2 * n_z
        + n_z * n_dec_1 + n_dec_1 * n_dec_2 + n_dec_2 * n_input)
    io_bytes = 4 * b_pad * (2 * n_input + n_z + zms_w)
    cost = pl.CostEstimate(
        flops=flops,
        transcendentals=b_pad * n_input,         # sigmoid on the output layer
        bytes_accessed=resident_bytes + io_bytes,
    )

    zms, x_bar = pl.pallas_call(
        functools.partial(_vae_kernel, dims=prepared["dims"], zms_w=zms_w),
        grid=grid,
        in_specs=in_specs,
        out_specs=out_specs,
        out_shape=out_shape,
        compiler_params=pltpu.CompilerParams(
            dimension_semantics=("parallel",),    # shard batch across TCs (v7x)
            vmem_limit_bytes=vmem_limit,
        ),
        cost_estimate=cost,
    )(x, eps, *weights, b_pack)

    z = zms[:B, :n_z]
    mu = zms[:B, n_z:2 * n_z]
    sigma = zms[:B, 2 * n_z:3 * n_z]
    return z, mu, sigma, x_bar[:B]


def init_params(key, n_enc_1, n_enc_2, n_dec_1, n_dec_2, n_input, n_z):
    """Deterministic PyTorch-Linear-style init: W [out,in], b [out]."""
    names_shapes = {
        "enc_1": (n_enc_1, n_input),
        "enc_2": (n_enc_2, n_enc_1),
        "enc_mu": (n_z, n_enc_2),
        "enc_sigma": (n_z, n_enc_2),
        "dec_1": (n_dec_1, n_z),
        "dec_2": (n_dec_2, n_dec_1),
        "x_bar": (n_input, n_dec_2),
    }
    params = {}
    for name, (out_f, in_f) in names_shapes.items():
        key, kw, kb = jax.random.split(key, 3)
        bound = 1.0 / jnp.sqrt(in_f)
        w = jax.random.uniform(kw, (out_f, in_f), jnp.float32, -bound, bound)
        b = jax.random.uniform(kb, (out_f,), jnp.float32, -bound, bound)
        params[name] = (w, b)
    return params


def vae_reference(x, eps, params):
    """Pure-JAX reference of the same forward pass (PyTorch convention)."""
    def lin(h, name):
        w, b = params[name]
        return h @ w.T + b

    h1 = jax.nn.relu(lin(x, "enc_1"))
    h2 = jax.nn.relu(lin(h1, "enc_2"))
    mu = lin(h2, "enc_mu")
    sigma = lin(h2, "enc_sigma")
    z = mu + eps * sigma
    d1 = jax.nn.relu(lin(z, "dec_1"))
    d2 = jax.nn.relu(lin(d1, "dec_2"))
    x_bar = jax.nn.sigmoid(lin(d2, "x_bar"))
    return z, mu, sigma, x_bar


if __name__ == "__main__":
    # Small, MLP-consistent shapes; B=20 with block_b=8 exercises the batch grid
    # (grid=(3,)) plus the padding/slicing path.
    B = 20
    n_input, n_enc_1, n_enc_2, n_z = 32, 64, 32, 16
    n_dec_1, n_dec_2 = 32, 64

    key = jax.random.PRNGKey(0)
    k_params, k_x, k_eps = jax.random.split(key, 3)

    params = init_params(k_params, n_enc_1, n_enc_2, n_dec_1, n_dec_2, n_input, n_z)
    prepared = prepare_params(params)   # one-time transpose / fuse / pack

    x = jax.random.normal(k_x, (B, n_input), jnp.float32)
    # eps drawn outside the kernel (deterministic), matching torch.randn_like(sigma).
    eps = jax.random.normal(k_eps, (B, n_z), jnp.float32)

    z, mu, sigma, x_bar = jax.block_until_ready(
        vae_forward(x, eps, prepared, block_b=8))

    z_r, mu_r, sigma_r, xbar_r = vae_reference(x, eps, params)
    assert jnp.allclose(z, z_r, atol=1e-5), "z mismatch"
    assert jnp.allclose(mu, mu_r, atol=1e-5), "mu mismatch"
    assert jnp.allclose(sigma, sigma_r, atol=1e-5), "sigma mismatch"
    assert jnp.allclose(x_bar, xbar_r, atol=1e-5), "x_bar mismatch"

    print("KERNEL_OK")
</pallas_src>

<mosaic_0001>
module attributes {stable_mosaic.version = 11 : i64} {
  func.func @_vae_kernel(%arg0: i32, %arg1: memref<8x32xf32, #tpu.memory_space<vmem>>, %arg2: memref<8x16xf32, #tpu.memory_space<vmem>>, %arg3: memref<32x64xf32, #tpu.memory_space<vmem>>, %arg4: memref<64x32xf32, #tpu.memory_space<vmem>>, %arg5: memref<32x32xf32, #tpu.memory_space<vmem>>, %arg6: memref<16x32xf32, #tpu.memory_space<vmem>>, %arg7: memref<32x64xf32, #tpu.memory_space<vmem>>, %arg8: memref<64x32xf32, #tpu.memory_space<vmem>>, %arg9: memref<8x128xf32, #tpu.memory_space<vmem>>, %arg10: memref<8x128xf32, #tpu.memory_space<vmem>>, %arg11: memref<8x32xf32, #tpu.memory_space<vmem>>) attributes {dimension_semantics = [#tpu.dimension_semantics<parallel>], iteration_bounds = array<i64: 3>, scalar_prefetch = 0 : i64, scratch_operands = 0 : i64, tpu.core_type = #tpu.core_type<tc>, window_params = [{transform_indices = @transform_0, window_bounds = array<i64: 8, 32>}, {transform_indices = @transform_1, window_bounds = array<i64: 8, 16>}, {pipeline_mode = #tpu.pipeline_mode<synchronous>, transform_indices = @transform_2, window_bounds = array<i64: 32, 64>}, {pipeline_mode = #tpu.pipeline_mode<synchronous>, transform_indices = @transform_3, window_bounds = array<i64: 64, 32>}, {pipeline_mode = #tpu.pipeline_mode<synchronous>, transform_indices = @transform_4, window_bounds = array<i64: 32, 32>}, {pipeline_mode = #tpu.pipeline_mode<synchronous>, transform_indices = @transform_5, window_bounds = array<i64: 16, 32>}, {pipeline_mode = #tpu.pipeline_mode<synchronous>, transform_indices = @transform_6, window_bounds = array<i64: 32, 64>}, {pipeline_mode = #tpu.pipeline_mode<synchronous>, transform_indices = @transform_7, window_bounds = array<i64: 64, 32>}, {pipeline_mode = #tpu.pipeline_mode<synchronous>, transform_indices = @transform_8, window_bounds = array<i64: 8, 128>}, {transform_indices = @transform_9, window_bounds = array<i64: 8, 128>}, {transform_indices = @transform_10, window_bounds = array<i64: 8, 32>}]} {
    %c0 = arith.constant 0 : index
    %c0_0 = arith.constant 0 : index
    %0 = vector.load %arg1[%c0, %c0_0] : memref<8x32xf32, #tpu.memory_space<vmem>>, vector<8x32xf32>
    %c0_1 = arith.constant 0 : index
    %c0_2 = arith.constant 0 : index
    %1 = vector.load %arg9[%c0_1, %c0_2] : memref<8x128xf32, #tpu.memory_space<vmem>>, vector<1x64xf32>
    %c1 = arith.constant 1 : index
    %c0_3 = arith.constant 0 : index
    %2 = vector.load %arg9[%c1, %c0_3] : memref<8x128xf32, #tpu.memory_space<vmem>>, vector<1x32xf32>
    %c2 = arith.constant 2 : index
    %c0_4 = arith.constant 0 : index
    %3 = vector.load %arg9[%c2, %c0_4] : memref<8x128xf32, #tpu.memory_space<vmem>>, vector<1x32xf32>
    %c3 = arith.constant 3 : index
    %c0_5 = arith.constant 0 : index
    %4 = vector.load %arg9[%c3, %c0_5] : memref<8x128xf32, #tpu.memory_space<vmem>>, vector<1x32xf32>
    %c4 = arith.constant 4 : index
    %c0_6 = arith.constant 0 : index
    %5 = vector.load %arg9[%c4, %c0_6] : memref<8x128xf32, #tpu.memory_space<vmem>>, vector<1x64xf32>
    %c5 = arith.constant 5 : index
    %c0_7 = arith.constant 0 : index
    %6 = vector.load %arg9[%c5, %c0_7] : memref<8x128xf32, #tpu.memory_space<vmem>>, vector<1x32xf32>
    %c0_8 = arith.constant 0 : index
    %c0_9 = arith.constant 0 : index
    %7 = vector.load %arg3[%c0_8, %c0_9] : memref<32x64xf32, #tpu.memory_space<vmem>>, vector<32x64xf32>
    %cst = arith.constant dense<0.000000e+00> : vector<8x64xf32>
    %8 = tpu.matmul %0, %7, %cst {dimension_numbers = #tpu.dot_dimension_numbers<[1], [0], [0], [1], [0, 0, 1, 1], [], []>} : vector<8x32xf32>, vector<32x64xf32>, vector<8x64xf32> -> vector<8x64xf32>
    %9 = vector.broadcast %1 : vector<1x64xf32> to vector<8x64xf32>
    %10 = arith.addf %8, %9 : vector<8x64xf32>
    %cst_10 = arith.constant 0.000000e+00 : f32
    %11 = vector.broadcast %cst_10 : f32 to vector<8x64xf32>
    %12 = arith.maximumf %10, %11 : vector<8x64xf32>
    %c0_11 = arith.constant 0 : index
    %c0_12 = arith.constant 0 : index
    %13 = vector.load %arg4[%c0_11, %c0_12] : memref<64x32xf32, #tpu.memory_space<vmem>>, vector<64x32xf32>
    %cst_13 = arith.constant dense<0.000000e+00> : vector<8x32xf32>
    %14 = tpu.matmul %12, %13, %cst_13 {dimension_numbers = #tpu.dot_dimension_numbers<[1], [0], [0], [1], [0, 0, 1, 1], [], []>} : vector<8x64xf32>, vector<64x32xf32>, vector<8x32xf32> -> vector<8x32xf32>
    %15 = vector.broadcast %2 : vector<1x32xf32> to vector<8x32xf32>
    %16 = arith.addf %14, %15 : vector<8x32xf32>
    %cst_14 = arith.constant 0.000000e+00 : f32
    %17 = vector.broadcast %cst_14 : f32 to vector<8x32xf32>
    %18 = arith.maximumf %16, %17 : vector<8x32xf32>
    %c0_15 = arith.constant 0 : index
    %c0_16 = arith.constant 0 : index
    %19 = vector.load %arg5[%c0_15, %c0_16] : memref<32x32xf32, #tpu.memory_space<vmem>>, vector<32x32xf32>
    %cst_17 = arith.constant dense<0.000000e+00> : vector<8x32xf32>
    %20 = tpu.matmul %18, %19, %cst_17 {dimension_numbers = #tpu.dot_dimension_numbers<[1], [0], [0], [1], [0, 0, 1, 1], [], []>} : vector<8x32xf32>, vector<32x32xf32>, vector<8x32xf32> -> vector<8x32xf32>
    %21 = vector.broadcast %3 : vector<1x32xf32> to vector<8x32xf32>
    %22 = arith.addf %20, %21 : vector<8x32xf32>
    %23 = vector.extract_strided_slice %22 {offsets = [0, 0], sizes = [8, 16], strides = [1, 1]} : vector<8x32xf32> to vector<8x16xf32>
    %24 = vector.extract_strided_slice %22 {offsets = [0, 16], sizes = [8, 16], strides = [1, 1]} : vector<8x32xf32> to vector<8x16xf32>
    %c0_18 = arith.constant 0 : index
    %c0_19 = arith.constant 0 : index
    %25 = vector.load %arg2[%c0_18, %c0_19] : memref<8x16xf32, #tpu.memory_space<vmem>>, vector<8x16xf32>
    %26 = arith.mulf %25, %24 : vector<8x16xf32>
    %27 = arith.addf %23, %26 : vector<8x16xf32>
    %c0_20 = arith.constant 0 : index
    %c0_21 = arith.constant 0 : index
    %28 = vector.load %arg6[%c0_20, %c0_21] : memref<16x32xf32, #tpu.memory_space<vmem>>, vector<16x32xf32>
    %cst_22 = arith.constant dense<0.000000e+00> : vector<8x32xf32>
    %29 = tpu.matmul %27, %28, %cst_22 {dimension_numbers = #tpu.dot_dimension_numbers<[1], [0], [0], [1], [0, 0, 1, 1], [], []>} : vector<8x16xf32>, vector<16x32xf32>, vector<8x32xf32> -> vector<8x32xf32>
    %30 = vector.broadcast %4 : vector<1x32xf32> to vector<8x32xf32>
    %31 = arith.addf %29, %30 : vector<8x32xf32>
    %cst_23 = arith.constant 0.000000e+00 : f32
    %32 = vector.broadcast %cst_23 : f32 to vector<8x32xf32>
    %33 = arith.maximumf %31, %32 : vector<8x32xf32>
    %c0_24 = arith.constant 0 : index
    %c0_25 = arith.constant 0 : index
    %34 = vector.load %arg7[%c0_24, %c0_25] : memref<32x64xf32, #tpu.memory_space<vmem>>, vector<32x64xf32>
    %cst_26 = arith.constant dense<0.000000e+00> : vector<8x64xf32>
    %35 = tpu.matmul %33, %34, %cst_26 {dimension_numbers = #tpu.dot_dimension_numbers<[1], [0], [0], [1], [0, 0, 1, 1], [], []>} : vector<8x32xf32>, vector<32x64xf32>, vector<8x64xf32> -> vector<8x64xf32>
    %36 = vector.broadcast %5 : vector<1x64xf32> to vector<8x64xf32>
    %37 = arith.addf %35, %36 : vector<8x64xf32>
    %cst_27 = arith.constant 0.000000e+00 : f32
    %38 = vector.broadcast %cst_27 : f32 to vector<8x64xf32>
    %39 = arith.maximumf %37, %38 : vector<8x64xf32>
    %c0_28 = arith.constant 0 : index
    %c0_29 = arith.constant 0 : index
    %40 = vector.load %arg8[%c0_28, %c0_29] : memref<64x32xf32, #tpu.memory_space<vmem>>, vector<64x32xf32>
    %cst_30 = arith.constant dense<0.000000e+00> : vector<8x32xf32>
    %41 = tpu.matmul %39, %40, %cst_30 {dimension_numbers = #tpu.dot_dimension_numbers<[1], [0], [0], [1], [0, 0, 1, 1], [], []>} : vector<8x64xf32>, vector<64x32xf32>, vector<8x32xf32> -> vector<8x32xf32>
    %42 = vector.broadcast %6 : vector<1x32xf32> to vector<8x32xf32>
    %43 = arith.addf %41, %42 : vector<8x32xf32>
    %44 = arith.negf %43 : vector<8x32xf32>
    %45 = math.exp %44 : vector<8x32xf32>
    %cst_31 = arith.constant 1.000000e+00 : f32
    %46 = vector.broadcast %cst_31 : f32 to vector<8x32xf32>
    %47 = arith.addf %46, %45 : vector<8x32xf32>
    %48 = arith.divf %46, %47 : vector<8x32xf32>
    %cst_32 = arith.constant 0.000000e+00 : f32
    %49 = vector.broadcast %cst_32 : f32 to vector<8x80xf32>
    %50 = tpu.concatenate %27, %22, %49 in 1 : vector<8x16xf32>, vector<8x32xf32>, vector<8x80xf32> -> vector<8x128xf32>
    %c0_33 = arith.constant 0 : index
    %c0_34 = arith.constant 0 : index
    %51 = vector.load %arg10[%c0_33, %c0_34] : memref<8x128xf32, #tpu.memory_space<vmem>>, vector<8x128xf32>
    tpu.vector_store %arg10[%c0_33, %c0_34], %50 {strides = array<i32>} : memref<8x128xf32, #tpu.memory_space<vmem>>, vector<8x128xf32>,
    %c0_35 = arith.constant 0 : index
    %c0_36 = arith.constant 0 : index
    %52 = vector.load %arg11[%c0_35, %c0_36] : memref<8x32xf32, #tpu.memory_space<vmem>>, vector<8x32xf32>
    tpu.vector_store %arg11[%c0_35, %c0_36], %48 {strides = array<i32>} : memref<8x32xf32, #tpu.memory_space<vmem>>, vector<8x32xf32>,
    return
  }
  func.func @transform_0(%arg0: i32) -> (i32, i32) {
    %c0_i32 = arith.constant 0 : i32
    %c0_i32_0 = arith.constant 0 : i32
    return %arg0, %c0_i32 : i32, i32
  }
  func.func @transform_1(%arg0: i32) -> (i32, i32) {
    %c0_i32 = arith.constant 0 : i32
    %c0_i32_0 = arith.constant 0 : i32
    return %arg0, %c0_i32 : i32, i32
  }
  func.func @transform_2(%arg0: i32) -> (i32, i32) {
    %c0_i32 = arith.constant 0 : i32
    %c0_i32_0 = arith.constant 0 : i32
    %c0_i32_1 = arith.constant 0 : i32
    return %c0_i32, %c0_i32_0 : i32, i32
  }
  func.func @transform_3(%arg0: i32) -> (i32, i32) {
    %c0_i32 = arith.constant 0 : i32
    %c0_i32_0 = arith.constant 0 : i32
    %c0_i32_1 = arith.constant 0 : i32
    return %c0_i32, %c0_i32_0 : i32, i32
  }
  func.func @transform_4(%arg0: i32) -> (i32, i32) {
    %c0_i32 = arith.constant 0 : i32
    %c0_i32_0 = arith.constant 0 : i32
    %c0_i32_1 = arith.constant 0 : i32
    return %c0_i32, %c0_i32_0 : i32, i32
  }
  func.func @transform_5(%arg0: i32) -> (i32, i32) {
    %c0_i32 = arith.constant 0 : i32
    %c0_i32_0 = arith.constant 0 : i32
    %c0_i32_1 = arith.constant 0 : i32
    return %c0_i32, %c0_i32_0 : i32, i32
  }
  func.func @transform_6(%arg0: i32) -> (i32, i32) {
    %c0_i32 = arith.constant 0 : i32
    %c0_i32_0 = arith.constant 0 : i32
    %c0_i32_1 = arith.constant 0 : i32
    return %c0_i32, %c0_i32_0 : i32, i32
  }
  func.func @transform_7(%arg0: i32) -> (i32, i32) {
    %c0_i32 = arith.constant 0 : i32
    %c0_i32_0 = arith.constant 0 : i32
    %c0_i32_1 = arith.constant 0 : i32
    return %c0_i32, %c0_i32_0 : i32, i32
  }
  func.func @transform_8(%arg0: i32) -> (i32, i32) {
    %c0_i32 = arith.constant 0 : i32
    %c0_i32_0 = arith.constant 0 : i32
    %c0_i32_1 = arith.constant 0 : i32
    return %c0_i32, %c0_i32_0 : i32, i32
  }
  func.func @transform_9(%arg0: i32) -> (i32, i32) {
    %c0_i32 = arith.constant 0 : i32
    %c0_i32_0 = arith.constant 0 : i32
    return %arg0, %c0_i32 : i32, i32
  }
  func.func @transform_10(%arg0: i32) -> (i32, i32) {
    %c0_i32 = arith.constant 0 : i32
    %c0_i32_0 = arith.constant 0 : i32
    return %arg0, %c0_i32 : i32, i32
  }
}

</mosaic_0001>

<bundles_post_ra>
// kernel: tpu_custom_call.1
= control target key start
LH: loop header
LB: loop body
LE: loop exit
PB: predicated region body
PF: predicated region fallthrough
CT: control target
= control target key end

     0   :  { %s1732_s0 = inlined_call_operand.vmem [shape: f32[24,32], index: 0, kind: input, shape index: {}]   ;;  %s1733_s1 = inlined_call_operand.vmem [shape: f32[24,16], index: 1, kind: input, shape index: {}]   ;;  %s1734_s2 = inlined_call_operand.vmem [shape: f32[32,64], index: 2, kind: input, shape index: {}]   ;;  %s1735_s3 = inlined_call_operand.vmem [shape: f32[64,32], index: 3, kind: input, shape index: {}]   ;;  %s1736_s4 = inlined_call_operand.vmem [shape: f32[32,32], index: 4, kind: input, shape index: {}]   ;;  %s1737_s5 = inlined_call_operand.vmem [shape: f32[16,32], index: 5, kind: input, shape index: {}]   ;;  %s1738_s6 = inlined_call_operand.vmem [shape: f32[32,64], index: 6, kind: input, shape index: {}]   ;;  %s1739_s7 = inlined_call_operand.vmem [shape: f32[64,32], index: 7, kind: input, shape index: {}]   ;;  %s1740_s8 = inlined_call_operand.vmem [shape: f32[8,128], index: 8, kind: input, shape index: {}]   ;;  %s1741_s9 = inlined_call_operand.hbm [shape: f32[24,128], index: 9, kind: output, shape index: {0}]   ;;  %s1742_s10 = inlined_call_operand.hbm [shape: f32[24,32], index: 10, kind: output, shape index: {1}]  }
   0x1   :  { %1745 = sst [smem:[#allocation8_spill]] %s1732_s0 }
   0x2   :  { %16 = vsyncpa [#allocation3], 0 }
   0x3   :  { %18 = vsyncpa [#allocation3 + $0x1], 0 }
   0x4   :  { %19 = vsyncpa [#allocation5], 0 }
   0x5   :  { %21 = vsyncpa [#allocation5 + $0x1], 0  ;;  %s1442_s13 = smov 0   ;;  %s1444_s14 = smov 0  }
   0x6   :  { %s1446_s15 = smov 0   ;;  %s1448_s16 = smov 0  }
   0x7 LB: > { %s1463_s17 = sadd.s32 4294967295, %s1378_s16   ;;  %s1045_s18 = sadd.s32 4294967294, %s1378_s16   ;;  %s1378_s16 = sphi %s1448_s16, %s1754_s16   ;;  %s1374_s15 = sphi %s1446_s15, %s1753_s15   ;;  %s1370_s14 = sphi %s1444_s14, %s1752_s14   ;;  %s1366_s13 = sphi %s1442_s13, %s1751_s13  }
   0x8   : > { %s1467_s19 = sadd.s32 1, %s1378_s16   ;;  %s233_s20 = sadd.s32 1, %s1374_s15 }
   0x9   : > { %s230_s21 = ssub.s32 %s1378_s16, %s1467_s19  ;;  %p243_p0 = scmp.ne.s32.totalorder %s1374_s15, %s1370_s14 }
   0xa   : > { %p231_p1 = scmp.eq.s32.totalorder %s230_s21, 0  ;;  %p244_p2 = scmp.eq.s32.totalorder %s1463_s17, 2 }
   0xb   : > { %p249_p3 = scmp.ne.s32.totalorder %s1370_s14, %s1366_s13  ;;  %p250_p4 = scmp.eq.s32.totalorder %s1045_s18, 2 }
   0xc   : > { %s1478_s22 = scalar_select %p231_p1, %s1374_s15, %s233_s20  }
   0xd   : > { %p1480_p5 = por %p244_p2, %p243_p0  ;;  %p1484_p6 = por %p250_p4, %p249_p3 }
   0xe   : > { %p1048_p7 = scmp.ge.s32.totalorder %s1378_s16, 1  ;;  %p329_p8 = scmp.lt.s32.totalorder %s1378_s16, 4 }
  0x10   : > { %p330_p9 = pnand %p1048_p7, %p329_p8 }
  0x11   : > { %v390_v0 = vld [vmem:[%s1734_s2] sm:$0xff] (!%p330_p9)  ;;  %v391_v1 = vld [vmem:[%s1734_s2 + $0x8] sm:$0xff] (!%p330_p9)  ;;  %v392_v2 = vld [vmem:[%s1734_s2 + $0x10] sm:$0xff] (!%p330_p9)  ;;  %v1380_v3 = vmov (!%p330_p9), 0.0|0.0   ;;  %vm1381_vm0 = vmmov (!%p330_p9), 0   ;;  %v1382_v6 = vmov (!%p330_p9), 0.0  }
  0x12   : > { %333 = sbr.rel (%p330_p9) target bundleno = 1481 (0x5c9), region = 56  ;;  %1186 = vmatprep.subr.bf16.mxu1 (!%p330_p9), %v1380_v3  ;;  %v1187_v4 = vpack.c.bf16 (!%p330_p9), %v391_v1, %v390_v0  ;;  %v393_v5 = vld [vmem:[%s1734_s2 + $0x18] sm:$0xff] (!%p330_p9)  ;;  %1116 = vmatprep.mubr.msk.f32.mxu1 (!%p330_p9), %vm1381_vm0, %v1382_v6  ;;  %p375_p10 = scmp.lt.s32.totalorder (!%p330_p9), %s1463_s17, 2  ;;  %v473_v8 = vld [vmem:[%s1735_s3] sm:$0xff] (!%p330_p9)  ;;  %v474_v9 = vld [vmem:[%s1735_s3 + $0x8] sm:$0xff] (!%p330_p9)  ;;  %vm398_vm1 = vcmask (!%p330_p9), 261120  }
  0x13   : > { %1204 = vmatprep.subr.bf16.mxu0 (!%p330_p9), %v1380_v3  ;;  %1146 = vmatprep.mubr.msk.f32.mxu0 (!%p330_p9), %vm1381_vm0, %v1382_v6  ;;  %v1190_v7 = vpack.c.bf16 (!%p330_p9), %v393_v5, %v392_v2  ;;  %s1748_s0 = sld [smem:[#allocation8_spill]] (!%p330_p9)  ;;  %v1193_v11 = vpack.c.bf16 (!%p330_p9), %v474_v9, %v473_v8  ;;  %v475_v12 = vld [vmem:[%s1735_s3 + $0x10] sm:$0xff] (!%p330_p9)  ;;  %v476_v13 = vld [vmem:[%s1735_s3 + $0x18] sm:$0xff] (!%p330_p9)  ;;  %v477_v15 = vld [vmem:[%s1735_s3 + $0x20] sm:$0xff] (!%p330_p9)  ;;  %vm485_vm2 = vcmask (!%p330_p9), 523264   ;;  %s1383_s29 = smov (!%p330_p9), 112  }
  0x14   : > { %1188 = vmatpush3.bf16.msra.mxu1 (!%p330_p9), %v1187_v4  ;;  %v1196_v14 = vpack.c.bf16 (!%p330_p9), %v476_v13, %v475_v12  ;;  %v478_v16 = vld [vmem:[%s1735_s3 + $0x28] sm:$0xff] (!%p330_p9)  ;;  %v479_v18 = vld [vmem:[%s1735_s3 + $0x30] sm:$0xff] (!%p330_p9)  ;;  %v480_v19 = vld [vmem:[%s1735_s3 + $0x38] sm:$0xff] (!%p330_p9)  ;;  %s1600_s21 = sand.u32 (!%p330_p9), 1, %s1370_s14   ;;  %vm654_vm3 = vcmask (!%p330_p9), 130048   ;;  %vm906_vm4 = vcmask (!%p330_p9), 392192  }
  0x15   : > { %1189 = vmatprep.subr.bf16.mxu1 (!%p330_p9), %v1380_v3  ;;  %v1199_v17 = vpack.c.bf16 (!%p330_p9), %v478_v16, %v477_v15  ;;  %v1202_v20 = vpack.c.bf16 (!%p330_p9), %v480_v19, %v479_v18  ;;  %v560_v21 = vld [vmem:[%s1736_s4] sm:$0xff] (!%p330_p9)  ;;  %v561_v22 = vld [vmem:[%s1736_s4 + $0x8] sm:$0xff] (!%p330_p9)  ;;  %v562_v29 = vld [vmem:[%s1736_s4 + $0x10] sm:$0xff] (!%p330_p9)  ;;  %s1743_s25 = sshll.u32 (!%p330_p9), %s1600_s21, 3  ;;  %s1385_s26 = smov (!%p330_p9), [#allocation2]  }
  0x16   : > { %v1205_v23 = vpack.c.bf16 (!%p330_p9), %v561_v22, %v560_v21  ;;  %v1053_v24 = vld [vmem:[%s1740_s8] ss:$0 sm:$0xff] (!%p330_p9)  ;;  %v563_v30 = vld [vmem:[%s1736_s4 + $0x18] sm:$0xff] (!%p330_p9)  ;;  %v1055_v32 = vld [vmem:[%s1740_s8 + $0x1] ss:$0 sm:$0xff] (!%p330_p9)  ;;  %s1288_s28 = sshll.u32 (!%p330_p9), %s1385_s26, 4  ;;  %s1289_s28 = int_to_ptr.vmem [resolvable:$false] %s1288_s28 }
  0x17   : > { %v1208_v31 = vpack.c.bf16 (!%p330_p9), %v563_v30, %v562_v29  ;;  %v648_v37 = vld [vmem:[%s1737_s5] sm:$0xff] (!%p330_p9)  ;;  %v649_v38 = vld [vmem:[%s1737_s5 + $0x8] sm:$0xff] (!%p330_p9)  ;;  %v731_v54 = vld [vmem:[%s1738_s6 + $0x10] sm:$0xff] (!%p330_p9) }
  0x18   : > { %1191 = vmatpush3.bf16.msra.mxu1 (!%p330_p9), %v1190_v7  ;;  %1206 = vmatpush3.bf16.msra.mxu0 (!%p330_p9), %v1205_v23  ;;  %v1211_v39 = vpack.c.bf16 (!%p330_p9), %v649_v38, %v648_v37  ;;  %v729_v40 = vld [vmem:[%s1738_s6] sm:$0xff] (!%p330_p9)  ;;  %v730_v41 = vld [vmem:[%s1738_s6 + $0x8] sm:$0xff] (!%p330_p9)  ;;  %v732_v55 = vld [vmem:[%s1738_s6 + $0x18] sm:$0xff] (!%p330_p9) }
  0x19   : > { %s1510_s18 = scalar_select %p375_p10, %s1463_s17, 2  ;;  %1192 = vmatprep.subr.bf16.mxu1 %v1380_v3  ;;  %1207 = vmatprep.subr.bf16.mxu0 %v1380_v3  ;;  %v1214_v42 = vpack.c.bf16 %v730_v41, %v729_v40  ;;  %v1057_v43 = vld [vmem:[%s1740_s8 + $0x2] ss:$0 sm:$0xff]  ;;  %v1217_v56 = vpack.c.bf16 %v732_v55, %v731_v54  ;;  %v812_v58 = vld [vmem:[%s1739_s7 + $0x8] sm:$0xff]  ;;  %v813_v59 = vld [vmem:[%s1739_s7 + $0x10] sm:$0xff] }
  0x1a   : > { %v811_v57 = vld [vmem:[%s1739_s7] sm:$0xff]  ;;  %v814_v61 = vld [vmem:[%s1739_s7 + $0x18] sm:$0xff]  ;;  %v816_v0 = vld [vmem:[%s1739_s7 + $0x28] sm:$0xff] }
  0x1b   : > { %s1051_s27 = sshll.u32 %s1510_s18, 3  ;;  %s1607_s18 = scalar_lea.vmem [#allocation2], %s1743_s25  ;;  %v1220_v60 = vpack.c.bf16 %v812_v58, %v811_v57  ;;  %v1223_v62 = vpack.c.bf16 %v814_v61, %v813_v59  ;;  %v815_v63 = vld [vmem:[%s1739_s7 + $0x20] sm:$0xff]  ;;  %v817_v8 = vld [vmem:[%s1739_s7 + $0x30] sm:$0xff] }
  0x1c   : > { %s378_s30 = scalar_lea.vmem %s1748_s0, %s1051_s27  ;;  %1209 = vmatpush3.bf16.msra.mxu0 %v1208_v31  ;;  %s382_s20 = scalar_lea.vmem %s1733_s1, %s1051_s27  ;;  %v1226_v1 = vpack.c.bf16 %v816_v0, %v815_v63  ;;  %v1059_v2 = vld [vmem:[%s1740_s8 + $0x3] ss:$0 sm:$0xff] }
  0x1d   : > { %v383_v10 = vld [vmem:[%s378_s30] sm:$0xff]  ;;  %1210 = vmatprep.subr.bf16.mxu0 %v1380_v3  ;;  %s1384_s30 = smov 16   ;;  %s929_s12 = sshll.u32 %s1607_s18, 4  ;;  %s930_s12 = int_to_ptr.vmem [resolvable:$true] %s929_s12 }
  0x1e   : > { %1117 = vmatmul.mubr.msk.f32.vlgmr.msra.gmra.mrb[0].mxu1 %vm398_vm1, %v383_v10  ;;  %v641_v47 = vld [vmem:[%s382_s20] sm:$0xff]  ;;  %s911_s20 = scalar_lea.sflag [#allocation3], %s1600_s21  ;;  %s1284_s27 = scalar_lea.vmem %s930_s12, 128 }
  0x1f   : > { %1194 = vmatpush3.bf16.msra.mxu1 %v1193_v11  ;;  %1135 = vmatprep.mubr.msk.f32.mxu1 %vm1381_vm0, %v1382_v6  ;;  %v1061_v10 = vld [vmem:[%s1740_s8 + $0x4] ss:$0 sm:$0xff]  ;;  %p1285_p11 = scmp.ne.s32.totalorder %s930_s12, %s1284_s27  ;;  %p1291_p0 = scmp.lt.s32.totalorder %s930_s12, %s1289_s28 }
  0x20   : > { %1195 = vmatprep.subr.bf16.mxu1 %v1380_v3 }
  0x21   : > { %p1286_p12 = pnand %p1285_p11, %p1480_p5 }
  0x23   : > { %1197 = vmatpush3.bf16.msra.mxu1 %v1196_v14  ;;  %p1287_p13 = pneg %p1286_p12 }
  0x24   : > { %1198 = vmatprep.subr.bf16.mxu1 %v1380_v3 }
  0x27   : > { %1200 = vmatpush3.bf16.msra.mxu1 %v1199_v17 }
  0x28   : > { %1201 = vmatprep.subr.bf16.mxu1 %v1380_v3 }
  0x2b   : > { %1203 = vmatpush3.bf16.msra.mxu1 %v1202_v20 }
  0x2c   : > { %1213 = vmatprep.subr.bf16.mxu1 %v1380_v3 }
  0xf1   : > { %v468_v25 = vpop.f32.mrb[0].mxu1 }
  0xf2   : > { %v469_v26 = vadd.f32 %v1053_v24, %v468_v25  ;;  %v1118_v27 = vpop.f32.mrb[1].mxu1 }
  0xf4   : > { %v472_v28 = vmax.f32 %v469_v26, 0.0 }
  0xf6   : > { %1136 = vmatmul.mubr.msk.f32.vlgmr.msra.gmra.mrb[2].mxu1 %vm485_vm2, %v472_v28 }
  0xf7   : > { %1164 = vmatprep.mubr.msk.f32.mxu1 %vm1381_vm0, %v1382_v6  ;;  %1215 = vmatpush3.bf16.msra.mxu1 %v1214_v42 }
  0xf8   : > { %1216 = vmatprep.subr.bf16.mxu1 %v1380_v3 }
  0xfb   : > { %1218 = vmatpush3.bf16.msra.mxu1 %v1217_v56 }
 0x1c9   : > { %v555_v33 = vpop.f32.mrb[2].mxu1 }
 0x1ca   : > { %v556_v34 = vadd.f32 %v1055_v32, %v555_v33  ;;  %v1137_v35 = vpop.f32.mrb[3].mxu1 }
 0x1cc   : > { %v559_v36 = vmax.f32 %v556_v34, 0.0 }
 0x1ce   : > { %1147 = vmatmul.mubr.msk.f32.vlgmr.msra.gmra.mrb[0].mxu0 %vm398_vm1, %v559_v36 }
 0x1cf   : > { %1153 = vmatprep.mubr.msk.f32.mxu0 %vm1381_vm0, %v1382_v6  ;;  %1212 = vmatpush3.bf16.msra.mxu0 %v1211_v39 }
 0x1d0   : > { %1219 = vmatprep.subr.bf16.mxu0 %v1380_v3 }
 0x2a1   : > { %v637_v44 = vpop.f32.mrb[0].mxu0 }
 0x2a2   : > { %v638_v45 = vadd.f32 %v1057_v43, %v637_v44  ;;  %v1148_v46 = vpop.f32.mrb[1].mxu0 }
 0x2a4   : > { %643 = vrot.lane.b32.xlu0 %v638_v45, %s1383_s29  ;;  %s1290_s29 = scalar_lea.vmem %s1289_s28, 256 }
 0x2a5   : > { %p1292_p1 = scmp.lt.s32.totalorder %s1290_s29, %s1284_s27 }
 0x2a7   : > { %p1293_p2 = por %p1292_p1, %p1291_p0 }
 0x2a8   : > { %902 = vrot.lane.b32.xlu0 %v638_v45, %s1384_s30  ;;  %s1744_s30 = sshll.u32 %s1463_s17, 7 }
 0x2a9   : > { %s1657_s25 = scalar_lea.hbm %s1741_s9, %s1744_s30  ;;  %p1294_p3 = pnand %p1293_p2, %p1287_p13 }
 0x316   : > { %v644_v48 = vpop.permute.xlu0 %643 }
 0x317   : > { %v646_v49 = vmul.f32 %v644_v48, %v641_v47 }
 0x319   : > { %v647_v50 = vadd.f32 %v646_v49, %v638_v45 }
 0x31a   : > { %v903_v51 = vpop.permute.xlu0 %902 }
 0x31b   : > { %v905_v52 = vsel %vm654_vm3, %v647_v50, %v903_v51  ;;  %1154 = vmatmul.mubr.msk.f32.vlgmr.msra.gmra.mrb[2].mxu0 %vm654_vm3, %v647_v50 }
 0x31c   : > { %v907_v53 = vsel %vm906_vm4, %v905_v52, 0.0  ;;  %1183 = vmatprep.mubr.msk.f32.mxu0 %vm1381_vm0, %v1382_v6  ;;  %1221 = vmatpush3.bf16.msra.mxu0 %v1220_v60 }
 0x31d   : > { %908 = vst [vmem:[%s1607_s18] sm:$0xff] %v907_v53  ;;  %1222 = vmatprep.subr.bf16.mxu0 %v1380_v3 }
 0x320   : > { %1224 = vmatpush3.bf16.msra.mxu0 %v1223_v62 }
 0x321   : > { %1225 = vmatprep.subr.bf16.mxu0 %v1380_v3 }
 0x324   : > { %1227 = vmatpush3.bf16.msra.mxu0 %v1226_v1 }
 0x325   : > { %1228 = vmatprep.subr.bf16.mxu0 %v1380_v3  ;;  %v818_v3 = vld [vmem:[%s1739_s7 + $0x38] sm:$0xff] }
 0x326   : > { %v1229_v9 = vpack.c.bf16 %v818_v3, %v817_v8 }
 0x328   : > { %1230 = vmatpush3.bf16.msra.mxu0 %v1229_v9 }
 0x3ee   : > { %v724_v4 = vpop.f32.mrb[2].mxu0 }
 0x3ef   : > { %v725_v5 = vadd.f32 %v1059_v2, %v724_v4  ;;  %v1155_v6 = vpop.f32.mrb[3].mxu0 }
 0x3f1   : > { %v728_v7 = vmax.f32 %v725_v5, 0.0 }
 0x3f3   : > { %1165 = vmatmul.mubr.msk.f32.vlgmr.msra.gmra.mrb[4].mxu1 %vm398_vm1, %v728_v7 }
 0x4c6   : > { %v806_v11 = vpop.f32.mrb[4].mxu1 }
 0x4c7   : > { %v807_v12 = vadd.f32 %v1061_v10, %v806_v11  ;;  %v1166_v13 = vpop.f32.mrb[5].mxu1 }
 0x4c9   : > { %v810_v14 = vmax.f32 %v807_v12, 0.0 }
 0x4cb   : > { %1184 = vmatmul.mubr.msk.f32.vlgmr.msra.gmra.mrb[4].mxu0 %vm485_vm2, %v810_v14 }
 0x4cc   : > { %1297 = shalt.err (!%p1294_p3)
}
 0x4cd   : > { %s1298_s18 = scalar_lea.hbm %s1657_s25, 128  ;;  %s1302_s26 = scalar_lea.hbm %s1741_s9, 384 }
 0x4ce   : > { %p1299_p4 = scmp.ne.s32.totalorder %s1657_s25, %s1298_s18  ;;  %p1303_p9 = scmp.lt.u32.totalorder %s1657_s25, %s1741_s9 }
 0x4cf   : > { %p1304_p10 = scmp.lt.u32.totalorder %s1302_s26, %s1298_s18  ;;  %p1306_p12 = scmp.lt.u32.totalorder %s1298_s18, %s1657_s25 }
 0x4d0   : > { %p1300_p7 = pnand %p1299_p4, %p1480_p5 }
 0x4d1   : > { %p1305_p11 = por %p1304_p10, %p1303_p9 }
 0x4d2   : > { %p1301_p8 = pneg %p1300_p7 }
 0x4d3   : > { %p1307_p13 = por %p1306_p12, %p1305_p11 }
 0x4d5   : > { %p1308_p0 = pnand %p1307_p13, %p1301_p8 }
 0x4d7   : > { %1311 = shalt.err (!%p1308_p0)
}
 0x4d8   : > { %1231 = dma.vmem_to_hbm [thread:$0]  (%p1480_p5), %s930_s12, 128, %s1657_s25, %s911_s20   ;;  %v1063_v15 = vld [vmem:[%s1740_s8 + $0x5] ss:$0 sm:$0xff] }
 0x4d9   : > { %s1749_s30 = sshll.u32 %s1600_s21, 3  ;;  %s1750_s0 = sshll.u32 %s1463_s17, 7 }
 0x4da   : > { %s374_s18 = scalar_lea.vmem [#allocation4], %s1749_s30  ;;  %s1688_s12 = scalar_lea.hbm %s1742_s10, %s1750_s0 }
 0x4db   : > { %s942_s11 = sshll.u32 %s374_s18, 4  ;;  %s916_s20 = scalar_lea.sflag [#allocation5], %s1600_s21  ;;  %s1690_s11 = int_to_ptr.vmem [resolvable:$true] %s942_s11 }
 0x4dc   : > { %s1312_s28 = scalar_lea.vmem %s1690_s11, 128  ;;  %s1386_s17 = smov [#allocation4]  }
 0x4dd   : > { %p1313_p1 = scmp.ne.s32.totalorder %s1690_s11, %s1312_s28  ;;  %s1316_s27 = sshll.u32 %s1386_s17, 4  ;;  %s1317_s27 = int_to_ptr.vmem [resolvable:$false] %s1316_s27 }
 0x4de   : > { %s1318_s29 = scalar_lea.vmem %s1317_s27, 256  ;;  %p1319_p4 = scmp.lt.s32.totalorder %s1690_s11, %s1317_s27 }
 0x4df   : > { %p1314_p2 = pnand %p1313_p1, %p1480_p5  ;;  %p1320_p7 = scmp.lt.s32.totalorder %s1318_s29, %s1312_s28 }
 0x4e1   : > { %p1315_p3 = pneg %p1314_p2  ;;  %p1321_p8 = por %p1320_p7, %p1319_p4 }
 0x4e3   : > { %p1322_p9 = pnand %p1321_p8, %p1315_p3 }
 0x59e   : > { %v892_v16 = vpop.f32.mrb[4].mxu0 }
 0x59f   : > { %v893_v17 = vadd.f32 %v1063_v15, %v892_v16  ;;  %v1185_v18 = vpop.f32.mrb[5].mxu0 }
 0x5a1   : > { %v1065_v19 = vmul.f32 -1.442695, %v893_v17 }
 0x5a3   : > { %1280 = vpow2.f32 %v1065_v19 }
 0x5ad   : > { %v1281_v20 = vpop.eup %1280 }
 0x5ae   : > { %v899_v21 = vadd.f32 1.0, %v1281_v20 }
 0x5b0   : > { %1282 = vrcp.f32 %v899_v21 }
 0x5ba   : > { %v1283_v22 = vpop.eup %1282 }
 0x5bb   : > { %909 = vst.msk [vmem:[%s374_s18] sm:$0xff] %vm398_vm1, %v1283_v22 }
 0x5bc   : > { %1325 = shalt.err (!%p1322_p9)
}
 0x5bd   : > { %s1326_s21 = scalar_lea.hbm %s1688_s12, 128  ;;  %s1330_s0 = scalar_lea.hbm %s1742_s10, 384 }
 0x5be   : > { %p1327_p10 = scmp.ne.s32.totalorder %s1688_s12, %s1326_s21  ;;  %p1331_p13 = scmp.lt.u32.totalorder %s1688_s12, %s1742_s10 }
 0x5bf   : > { %p1332_p0 = scmp.lt.u32.totalorder %s1330_s0, %s1326_s21  ;;  %p1334_p2 = scmp.lt.u32.totalorder %s1326_s21, %s1688_s12 }
 0x5c0   : > { %p1328_p11 = pnand %p1327_p10, %p1480_p5 }
 0x5c1   : > { %p1333_p1 = por %p1332_p0, %p1331_p13 }
 0x5c2   : > { %p1329_p12 = pneg %p1328_p11 }
 0x5c3   : > { %p1335_p3 = por %p1334_p2, %p1333_p1 }
 0x5c5   : > { %p1336_p4 = pnand %p1335_p3, %p1329_p12 }
 0x5c7   : > { %1339 = shalt.err (!%p1336_p4)
}
 0x5c8   : > { %1232 = dma.vmem_to_hbm [thread:$0]  (%p1480_p5), %s1690_s11, 128, %s1688_s12, %s916_s20  }
 0x5c9 PF: > { %p1242_p7 = scmp.ge.s32.totalorder %s1378_s16, 2  ;;  %s954_s28 = sand.u32 1, %s1366_s13  }
 0x5ca   : > { %s955_s17 = scalar_lea.sflag [#allocation3], %s954_s28 }
 0x5cb   : > { %p1236_p8 = pnand %p1242_p7, %p1484_p6 }
 0x5cd   : > { %1357 = dma.done.wait (!%p1236_p8), %s955_s17, 128  }
 0x5ce   : > { %1359 = vsyncadd (!%p1236_p8), %s955_s17, 4294967168  ;;  %s964_s27 = scalar_lea.sflag [#allocation5], %s954_s28 }
 0x5cf   : > { %1361 = dma.done.wait (!%p1236_p8), %s964_s27, 128  }
 0x5d0   : > { %1363 = vsyncadd (!%p1236_p8), %s964_s27, 4294967168  ;;  %p24_p5 = scmp.ge.s32.totalorder %s1467_s19, 5   ;;  %s1751_s13 = smov %s1370_s14 }
 0x5d1   : > { %s1752_s14 = smov %s1374_s15  ;;  %s1753_s15 = smov %s1478_s22 }
 0x5d2   : > { %s1754_s16 = smov %s1467_s19  ;;  %26 = sbr.rel (!%p24_p5) target bundleno = 7 (0x7), region = 111 }
 0x5d9   :  { %969 = vsyncpa [#allocation3], 1 }
 0x5da   :  { %971 = vsyncpa [#allocation3 + $0x1], 1 }
 0x5db   :  { %972 = vsyncpa [#allocation5], 1 }
 0x5dc   :  { %974 = vsyncpa [#allocation5 + $0x1], 1 }

</bundles_post_ra>
